<compile_context>
chip_gen: v7x
topology: tpu7x:2x2x1
jax: 0.10.0
libtpu: 0.0.40
codegen_flags: <defaults>
</compile_context>

<pallas_src>
import functools

import jax
import jax.numpy as jnp
from jax.experimental import pallas as pl
from jax.experimental.pallas import tpu as pltpu


def _round_up(x: int, m: int) -> int:
    return ((x + m - 1) // m) * m


def _critic_kernel(x_ref, w1_ref, b1_ref, w2_ref, b2_ref, w3_ref, b3_ref, out_ref):
    """Fused 3-layer MLP on one TM-row tile of the batch.

    x_ref : (TM, K_pad)   bf16
    w1    : (K_pad, F1)   bf16      b1: (1, F1)  f32
    w2    : (F1, F2)      bf16      b2: (1, F2)  f32
    w3    : (F2, 128)     bf16      b3: (1, 128) f32  (zero-padded beyond col 0)
    out   : (TM, 128)     f32       (only column 0 is the critic value)
    """
    x = x_ref[...]

    # Layer 1: bf16 matmul, f32 accumulate; bias + ReLU in f32.
    h1 = jnp.dot(x, w1_ref[...], preferred_element_type=jnp.float32) + b1_ref[...]
    h1 = jnp.maximum(h1, 0.0)

    # Layer 2.
    h2 = jnp.dot(h1.astype(jnp.bfloat16), w2_ref[...],
                 preferred_element_type=jnp.float32) + b2_ref[...]
    h2 = jnp.maximum(h2, 0.0)

    # Layer 3: lane-dense (256 -> 128 padded) projection; column 0 is the value.
    v = jnp.dot(h2.astype(jnp.bfloat16), w3_ref[...],
                preferred_element_type=jnp.float32) + b3_ref[...]
    out_ref[...] = v.astype(out_ref.dtype)


@jax.jit
def critic_forward(state, w1, b1, w2, b2, w3, b3):
    """Computes the PPO critic value: returns (B, 1) float32."""
    B, K = state.shape
    F1 = w1.shape[1]
    F2 = w2.shape[1]
    OUT_PAD = 128                      # lane-dense output width
    K_pad = _round_up(max(K, 1), 128)  # aligned K for the first matmul

    # Batch tiling: TM rows per grid step (multiple of 8 sublanes).
    TM = min(512, _round_up(B, 8))
    B_pad = _round_up(B, TM)

    # --- Boundary-side padding / dtype prep (zero padding keeps math exact). ---
    x = jnp.zeros((B_pad, K_pad), jnp.bfloat16).at[:B, :K].set(
        state.astype(jnp.bfloat16))
    w1p = jnp.zeros((K_pad, F1), jnp.bfloat16).at[:K, :].set(w1.astype(jnp.bfloat16))
    w2p = w2.astype(jnp.bfloat16)
    w3p = jnp.zeros((F2, OUT_PAD), jnp.bfloat16).at[:, :1].set(
        w3.astype(jnp.bfloat16))
    b1p = b1.reshape(1, F1).astype(jnp.float32)
    b2p = b2.reshape(1, F2).astype(jnp.float32)
    b3p = jnp.zeros((1, OUT_PAD), jnp.float32).at[:, :1].set(
        b3.reshape(1, 1).astype(jnp.float32))

    grid = (B_pad // TM,)
    const = lambda shape: pl.BlockSpec(shape, lambda i: (0, 0))  # VMEM-resident

    out = pl.pallas_call(
        _critic_kernel,
        out_shape=jax.ShapeDtypeStruct((B_pad, OUT_PAD), jnp.float32),
        grid=grid,
        in_specs=[
            pl.BlockSpec((TM, K_pad), lambda i: (i, 0)),   # streamed state tile
            const((K_pad, F1)), const((1, F1)),
            const((F1, F2)),    const((1, F2)),
            const((F2, OUT_PAD)), const((1, OUT_PAD)),
        ],
        out_specs=pl.BlockSpec((TM, OUT_PAD), lambda i: (i, 0)),
        compiler_params=pltpu.CompilerParams(
            dimension_semantics=("parallel",)),
    )(x, w1p, b1p, w2p, b2p, w3p, b3p)

    # Slice off batch padding and the lane padding of the final projection.
    return out[:B, :1]


def init_critic_params(key, input_dims, fc1_dims=256, fc2_dims=256):
    """Deterministic init mimicking PyTorch Linear default: U(-1/sqrt(fan_in), 1/sqrt(fan_in))."""
    ks = jax.random.split(key, 6)

    def linear(kw, kb, fan_in, fan_out):
        bound = 1.0 / jnp.sqrt(jnp.float32(fan_in))
        w = jax.random.uniform(kw, (fan_in, fan_out), jnp.float32, -bound, bound)
        b = jax.random.uniform(kb, (1, fan_out), jnp.float32, -bound, bound)
        return w, b

    w1, b1 = linear(ks[0], ks[1], input_dims, fc1_dims)
    w2, b2 = linear(ks[2], ks[3], fc1_dims, fc2_dims)
    w3, b3 = linear(ks[4], ks[5], fc2_dims, 1)
    return w1, b1, w2, b2, w3, b3


if __name__ == "__main__":
    key = jax.random.PRNGKey(0)
    k_param, k_state = jax.random.split(key)

    batch = 8
    input_dims = 32   # observation vector length
    fc1_dims = 256
    fc2_dims = 256

    params = init_critic_params(k_param, input_dims, fc1_dims, fc2_dims)
    state = jax.random.normal(k_state, (batch, input_dims), jnp.float32)

    value = critic_forward(state, *params)
    value = jax.block_until_ready(value)

    # Pure-JAX f32 reference (kernel uses bf16 inputs + f32 accumulation, so
    # tolerance is relaxed accordingly).
    w1, b1, w2, b2, w3, b3 = params
    ref = jnp.maximum(state @ w1 + b1, 0.0)
    ref = jnp.maximum(ref @ w2 + b2, 0.0)
    ref = ref @ w3 + b3
    assert value.shape == (batch, 1)
    assert jnp.allclose(value, ref, atol=2e-2, rtol=2e-2), (
        jnp.max(jnp.abs(value - ref)))

    print("KERNEL_OK")
</pallas_src>

<mosaic_0001>
module attributes {stable_mosaic.version = 11 : i64} {
  func.func @_critic_kernel(%arg0: i32, %arg1: memref<8x128xbf16, #tpu.memory_space<vmem>>, %arg2: memref<128x256xbf16, #tpu.memory_space<vmem>>, %arg3: memref<1x256xf32, #tpu.memory_space<vmem>>, %arg4: memref<256x256xbf16, #tpu.memory_space<vmem>>, %arg5: memref<1x256xf32, #tpu.memory_space<vmem>>, %arg6: memref<256x128xbf16, #tpu.memory_space<vmem>>, %arg7: memref<1x128xf32, #tpu.memory_space<vmem>>, %arg8: memref<8x128xf32, #tpu.memory_space<vmem>>) attributes {dimension_semantics = [#tpu.dimension_semantics<parallel>], iteration_bounds = array<i64: 1>, scalar_prefetch = 0 : i64, scratch_operands = 0 : i64, tpu.core_type = #tpu.core_type<tc>, window_params = [{transform_indices = @transform_0, window_bounds = array<i64: 8, 128>}, {pipeline_mode = #tpu.pipeline_mode<synchronous>, transform_indices = @transform_1, window_bounds = array<i64: 128, 256>}, {pipeline_mode = #tpu.pipeline_mode<synchronous>, transform_indices = @transform_2, window_bounds = array<i64: 1, 256>}, {pipeline_mode = #tpu.pipeline_mode<synchronous>, transform_indices = @transform_3, window_bounds = array<i64: 256, 256>}, {pipeline_mode = #tpu.pipeline_mode<synchronous>, transform_indices = @transform_4, window_bounds = array<i64: 1, 256>}, {pipeline_mode = #tpu.pipeline_mode<synchronous>, transform_indices = @transform_5, window_bounds = array<i64: 256, 128>}, {pipeline_mode = #tpu.pipeline_mode<synchronous>, transform_indices = @transform_6, window_bounds = array<i64: 1, 128>}, {transform_indices = @transform_7, window_bounds = array<i64: 8, 128>}]} {
    %c0 = arith.constant 0 : index
    %c0_0 = arith.constant 0 : index
    %0 = vector.load %arg1[%c0, %c0_0] : memref<8x128xbf16, #tpu.memory_space<vmem>>, vector<8x128xbf16>
    %c0_1 = arith.constant 0 : index
    %c0_2 = arith.constant 0 : index
    %1 = vector.load %arg2[%c0_1, %c0_2] : memref<128x256xbf16, #tpu.memory_space<vmem>>, vector<128x256xbf16>
    %cst = arith.constant dense<0.000000e+00> : vector<8x256xf32>
    %2 = tpu.matmul %0, %1, %cst {dimension_numbers = #tpu.dot_dimension_numbers<[1], [0], [0], [1], [0, 0, 1, 1], [], []>} : vector<8x128xbf16>, vector<128x256xbf16>, vector<8x256xf32> -> vector<8x256xf32>
    %c0_3 = arith.constant 0 : index
    %c0_4 = arith.constant 0 : index
    %3 = vector.load %arg3[%c0_3, %c0_4] : memref<1x256xf32, #tpu.memory_space<vmem>>, vector<1x256xf32>
    %4 = vector.broadcast %3 : vector<1x256xf32> to vector<8x256xf32>
    %5 = arith.addf %2, %4 : vector<8x256xf32>
    %cst_5 = arith.constant 0.000000e+00 : f32
    %6 = vector.broadcast %cst_5 : f32 to vector<8x256xf32>
    %7 = arith.maximumf %5, %6 : vector<8x256xf32>
    %8 = arith.truncf %7 : vector<8x256xf32> to vector<8x256xbf16>
    %c0_6 = arith.constant 0 : index
    %c0_7 = arith.constant 0 : index
    %9 = vector.load %arg4[%c0_6, %c0_7] : memref<256x256xbf16, #tpu.memory_space<vmem>>, vector<256x256xbf16>
    %cst_8 = arith.constant dense<0.000000e+00> : vector<8x256xf32>
    %10 = tpu.matmul %8, %9, %cst_8 {dimension_numbers = #tpu.dot_dimension_numbers<[1], [0], [0], [1], [0, 0, 1, 1], [], []>} : vector<8x256xbf16>, vector<256x256xbf16>, vector<8x256xf32> -> vector<8x256xf32>
    %c0_9 = arith.constant 0 : index
    %c0_10 = arith.constant 0 : index
    %11 = vector.load %arg5[%c0_9, %c0_10] : memref<1x256xf32, #tpu.memory_space<vmem>>, vector<1x256xf32>
    %12 = vector.broadcast %11 : vector<1x256xf32> to vector<8x256xf32>
    %13 = arith.addf %10, %12 : vector<8x256xf32>
    %cst_11 = arith.constant 0.000000e+00 : f32
    %14 = vector.broadcast %cst_11 : f32 to vector<8x256xf32>
    %15 = arith.maximumf %13, %14 : vector<8x256xf32>
    %16 = arith.truncf %15 : vector<8x256xf32> to vector<8x256xbf16>
    %c0_12 = arith.constant 0 : index
    %c0_13 = arith.constant 0 : index
    %17 = vector.load %arg6[%c0_12, %c0_13] : memref<256x128xbf16, #tpu.memory_space<vmem>>, vector<256x128xbf16>
    %cst_14 = arith.constant dense<0.000000e+00> : vector<8x128xf32>
    %18 = tpu.matmul %16, %17, %cst_14 {dimension_numbers = #tpu.dot_dimension_numbers<[1], [0], [0], [1], [0, 0, 1, 1], [], []>} : vector<8x256xbf16>, vector<256x128xbf16>, vector<8x128xf32> -> vector<8x128xf32>
    %c0_15 = arith.constant 0 : index
    %c0_16 = arith.constant 0 : index
    %19 = vector.load %arg7[%c0_15, %c0_16] : memref<1x128xf32, #tpu.memory_space<vmem>>, vector<1x128xf32>
    %20 = vector.broadcast %19 : vector<1x128xf32> to vector<8x128xf32>
    %21 = arith.addf %18, %20 : vector<8x128xf32>
    %c0_17 = arith.constant 0 : index
    %c0_18 = arith.constant 0 : index
    %22 = vector.load %arg8[%c0_17, %c0_18] : memref<8x128xf32, #tpu.memory_space<vmem>>, vector<8x128xf32>
    tpu.vector_store %arg8[%c0_17, %c0_18], %21 {strides = array<i32>} : memref<8x128xf32, #tpu.memory_space<vmem>>, vector<8x128xf32>,
    return
  }
  func.func @transform_0(%arg0: i32) -> (i32, i32) {
    %c0_i32 = arith.constant 0 : i32
    %c0_i32_0 = arith.constant 0 : i32
    return %arg0, %c0_i32 : i32, i32
  }
  func.func @transform_1(%arg0: i32) -> (i32, i32) {
    %c0_i32 = arith.constant 0 : i32
    %c0_i32_0 = arith.constant 0 : i32
    %c0_i32_1 = arith.constant 0 : i32
    return %c0_i32, %c0_i32_0 : i32, i32
  }
  func.func @transform_2(%arg0: i32) -> (i32, i32) {
    %c0_i32 = arith.constant 0 : i32
    %c0_i32_0 = arith.constant 0 : i32
    %c0_i32_1 = arith.constant 0 : i32
    return %c0_i32, %c0_i32_0 : i32, i32
  }
  func.func @transform_3(%arg0: i32) -> (i32, i32) {
    %c0_i32 = arith.constant 0 : i32
    %c0_i32_0 = arith.constant 0 : i32
    %c0_i32_1 = arith.constant 0 : i32
    return %c0_i32, %c0_i32_0 : i32, i32
  }
  func.func @transform_4(%arg0: i32) -> (i32, i32) {
    %c0_i32 = arith.constant 0 : i32
    %c0_i32_0 = arith.constant 0 : i32
    %c0_i32_1 = arith.constant 0 : i32
    return %c0_i32, %c0_i32_0 : i32, i32
  }
  func.func @transform_5(%arg0: i32) -> (i32, i32) {
    %c0_i32 = arith.constant 0 : i32
    %c0_i32_0 = arith.constant 0 : i32
    %c0_i32_1 = arith.constant 0 : i32
    return %c0_i32, %c0_i32_0 : i32, i32
  }
  func.func @transform_6(%arg0: i32) -> (i32, i32) {
    %c0_i32 = arith.constant 0 : i32
    %c0_i32_0 = arith.constant 0 : i32
    %c0_i32_1 = arith.constant 0 : i32
    return %c0_i32, %c0_i32_0 : i32, i32
  }
  func.func @transform_7(%arg0: i32) -> (i32, i32) {
    %c0_i32 = arith.constant 0 : i32
    %c0_i32_0 = arith.constant 0 : i32
    return %arg0, %c0_i32 : i32, i32
  }
}

</mosaic_0001>

<bundles_post_ra>
// kernel: critic_forward.1
= control target key start
LH: loop header
LB: loop body
LE: loop exit
PB: predicated region body
PF: predicated region fallthrough
CT: control target
= control target key end

     0   :  { %v786_v1 = vmov 0   ;;  %v46_v62 = vlaneseq  ;;  %s1034_s1 = inlined_call_operand.vmem [shape: bf16[128,256], index: 1, kind: input, shape index: {}]   ;;  %s1035_s3 = inlined_call_operand.vmem [shape: bf16[256,256], index: 3, kind: input, shape index: {}]   ;;  %s1036_s0 = inlined_call_operand.vmem [shape: bf16[8,128], index: 0, kind: input, shape index: {}]   ;;  %s1037_s5 = inlined_call_operand.vmem [shape: bf16[256,128], index: 5, kind: input, shape index: {}]   ;;  %s1038_s2 = inlined_call_operand.vmem [shape: f32[1,256], index: 2, kind: input, shape index: {}]   ;;  %s1039_s4 = inlined_call_operand.vmem [shape: f32[1,256], index: 4, kind: input, shape index: {}]   ;;  %s1040_s6 = inlined_call_operand.vmem [shape: f32[1,128], index: 6, kind: input, shape index: {}]   ;;  %s1041_s7 = inlined_call_operand.vmem [shape: f32[8,128], index: 7, kind: output, shape index: {}]  }
   0x1   :  { %v698_v0 = vld [vmem:[%s1034_s1 + $0x4] ss:$8 sps:$4 sm:$0xff]   ;;  %168 = vmatprep.mubr.bf16.mxu0 %v786_v1  ;;  %v700_v2 = vld [vmem:[%s1034_s1] ss:$8 sps:$4 sm:$0xff]   ;;  %v701_v3 = vld [vmem:[%s1034_s1 + $0x14] ss:$8 sps:$4 sm:$0xff]  }
   0x2   :  { %136 = vmatprep.subr.bf16.mxu0 %v698_v0  ;;  %v703_v4 = vld [vmem:[%s1034_s1 + $0x10] ss:$8 sps:$4 sm:$0xff]   ;;  %v704_v5 = vld [vmem:[%s1034_s1 + $0x24] ss:$8 sps:$4 sm:$0xff]   ;;  %v706_v6 = vld [vmem:[%s1034_s1 + $0x20] ss:$8 sps:$4 sm:$0xff]  }
   0x3   :  { %137 = vmatpush1.bf16.msra.mxu0 %v700_v2  ;;  %v707_v7 = vld [vmem:[%s1034_s1 + $0x34] ss:$8 sps:$4 sm:$0xff]   ;;  %v709_v8 = vld [vmem:[%s1034_s1 + $0x30] ss:$8 sps:$4 sm:$0xff]   ;;  %v710_v9 = vld [vmem:[%s1034_s1 + $0x44] ss:$8 sps:$4 sm:$0xff]  }
   0x4   :  { %138 = vmatprep.subr.bf16.mxu0 %v701_v3  ;;  %v722_v10 = vld [vmem:[%s1035_s3 + $0x4] ss:$8 sps:$4 sm:$0xff]   ;;  %v724_v11 = vld [vmem:[%s1035_s3] ss:$8 sps:$4 sm:$0xff]   ;;  %v725_v12 = vld [vmem:[%s1035_s3 + $0x14] ss:$8 sps:$4 sm:$0xff]  }
   0x5   :  { %385 = vmatprep.subr.bf16.mxu1 %v722_v10  ;;  %v712_v13 = vld [vmem:[%s1034_s1 + $0x40] ss:$8 sps:$4 sm:$0xff]   ;;  %v727_v14 = vld [vmem:[%s1035_s3 + $0x10] ss:$8 sps:$4 sm:$0xff]   ;;  %v728_v15 = vld [vmem:[%s1035_s3 + $0x24] ss:$8 sps:$4 sm:$0xff]  }
   0x6   :  { %386 = vmatpush1.bf16.msra.mxu1 %v724_v11  ;;  %v713_v16 = vld [vmem:[%s1034_s1 + $0x54] ss:$8 sps:$4 sm:$0xff]   ;;  %v715_v17 = vld [vmem:[%s1034_s1 + $0x50] ss:$8 sps:$4 sm:$0xff]   ;;  %v730_v18 = vld [vmem:[%s1035_s3 + $0x20] ss:$8 sps:$4 sm:$0xff]  }
   0x7   :  { %139 = vmatpush1.bf16.msra.mxu0 %v703_v4  ;;  %387 = vmatprep.subr.bf16.mxu1 %v725_v12  ;;  %v731_v19 = vld [vmem:[%s1035_s3 + $0x34] ss:$8 sps:$4 sm:$0xff]   ;;  %v716_v20 = vld [vmem:[%s1034_s1 + $0x64] ss:$8 sps:$4 sm:$0xff]   ;;  %v718_v21 = vld [vmem:[%s1034_s1 + $0x60] ss:$8 sps:$4 sm:$0xff]  }
   0x8   :  { %140 = vmatprep.subr.bf16.mxu0 %v704_v5  ;;  %v733_v22 = vld [vmem:[%s1035_s3 + $0x30] ss:$8 sps:$4 sm:$0xff]   ;;  %v734_v23 = vld [vmem:[%s1035_s3 + $0x44] ss:$8 sps:$4 sm:$0xff]   ;;  %v719_v24 = vld [vmem:[%s1034_s1 + $0x74] ss:$8 sps:$4 sm:$0xff]  }
   0x9   :  { %v721_v25 = vld [vmem:[%s1034_s1 + $0x70] ss:$8 sps:$4 sm:$0xff]   ;;  %v736_v26 = vld [vmem:[%s1035_s3 + $0x40] ss:$8 sps:$4 sm:$0xff]   ;;  %v737_v27 = vld [vmem:[%s1035_s3 + $0x54] ss:$8 sps:$4 sm:$0xff]  }
   0xa   :  { %388 = vmatpush1.bf16.msra.mxu1 %v727_v14  ;;  %v739_v28 = vld [vmem:[%s1035_s3 + $0x50] ss:$8 sps:$4 sm:$0xff]   ;;  %v27_v29 = vld [vmem:[%s1036_s0] sm:$0xf]  ;;  %v740_v30 = vld [vmem:[%s1035_s3 + $0x64] ss:$8 sps:$4 sm:$0xff]  }
   0xb   :  { %141 = vmatpush1.bf16.msra.mxu0 %v706_v6  ;;  %389 = vmatprep.subr.bf16.mxu1 %v728_v15  ;;  %v742_v31 = vld [vmem:[%s1035_s3 + $0x60] ss:$8 sps:$4 sm:$0xff]   ;;  %v743_v32 = vld [vmem:[%s1035_s3 + $0x74] ss:$8 sps:$4 sm:$0xff]   ;;  %v745_v33 = vld [vmem:[%s1035_s3 + $0x70] ss:$8 sps:$4 sm:$0xff]  }
   0xc   :  { %142 = vmatprep.subr.bf16.mxu0 %v707_v7  ;;  %v746_v34 = vld [vmem:[%s1035_s3 + $0x84] ss:$8 sps:$4 sm:$0xff]   ;;  %v748_v35 = vld [vmem:[%s1035_s3 + $0x80] ss:$8 sps:$4 sm:$0xff]   ;;  %v749_v36 = vld [vmem:[%s1035_s3 + $0x94] ss:$8 sps:$4 sm:$0xff]  }
   0xd   :  { %v751_v37 = vld [vmem:[%s1035_s3 + $0x90] ss:$8 sps:$4 sm:$0xff]   ;;  %v752_v38 = vld [vmem:[%s1035_s3 + $0xa4] ss:$8 sps:$4 sm:$0xff]   ;;  %v754_v39 = vld [vmem:[%s1035_s3 + $0xa0] ss:$8 sps:$4 sm:$0xff]  }
   0xe   :  { %390 = vmatpush1.bf16.msra.mxu1 %v730_v18  ;;  %v755_v40 = vld [vmem:[%s1035_s3 + $0xb4] ss:$8 sps:$4 sm:$0xff]   ;;  %v757_v41 = vld [vmem:[%s1035_s3 + $0xb0] ss:$8 sps:$4 sm:$0xff]   ;;  %v758_v42 = vld [vmem:[%s1035_s3 + $0xc4] ss:$8 sps:$4 sm:$0xff]  }
   0xf   :  { %143 = vmatpush1.bf16.msra.mxu0 %v709_v8  ;;  %391 = vmatprep.subr.bf16.mxu1 %v731_v19  ;;  %v760_v43 = vld [vmem:[%s1035_s3 + $0xc0] ss:$8 sps:$4 sm:$0xff]   ;;  %v761_v44 = vld [vmem:[%s1035_s3 + $0xd4] ss:$8 sps:$4 sm:$0xff]   ;;  %v763_v45 = vld [vmem:[%s1035_s3 + $0xd0] ss:$8 sps:$4 sm:$0xff]  }
  0x10   :  { %144 = vmatprep.subr.bf16.mxu0 %v710_v9  ;;  %v764_v46 = vld [vmem:[%s1035_s3 + $0xe4] ss:$8 sps:$4 sm:$0xff]   ;;  %v766_v47 = vld [vmem:[%s1035_s3 + $0xe0] ss:$8 sps:$4 sm:$0xff]   ;;  %v767_v48 = vld [vmem:[%s1035_s3 + $0xf4] ss:$8 sps:$4 sm:$0xff]  }
  0x11   :  { %v769_v49 = vld [vmem:[%s1035_s3 + $0xf0] ss:$8 sps:$4 sm:$0xff]   ;;  %v770_v50 = vld [vmem:[%s1037_s5 + $0x40] sm:$0xff]   ;;  %v772_v52 = vld [vmem:[%s1037_s5 + $0x48] sm:$0xff]   ;;  %v47_v63 = vshrl.u32 %v46_v62, 7 }
  0x12   :  { %392 = vmatpush1.bf16.msra.mxu1 %v733_v22  ;;  %v771_v51 = vld [vmem:[%s1037_s5] sm:$0xff]   ;;  %v773_v53 = vld [vmem:[%s1037_s5 + $0x8] sm:$0xff]   ;;  %v774_v54 = vld [vmem:[%s1037_s5 + $0x50] sm:$0xff]  }
  0x13   :  { %145 = vmatpush1.bf16.msra.mxu0 %v712_v13  ;;  %393 = vmatprep.subr.bf16.mxu1 %v734_v23  ;;  %v775_v55 = vld [vmem:[%s1037_s5 + $0x10] sm:$0xff]   ;;  %v776_v56 = vld [vmem:[%s1037_s5 + $0x58] sm:$0xff]   ;;  %v778_v58 = vld [vmem:[%s1037_s5 + $0x60] sm:$0xff]   ;;  %v48_v0 = vsub.s32 0, %v47_v63  ;;  %v52_v2 = vsub.s32 1, %v47_v63 }
  0x14   :  { %146 = vmatprep.subr.bf16.mxu0 %v713_v16  ;;  %v777_v57 = vld [vmem:[%s1037_s5 + $0x18] sm:$0xff]   ;;  %v779_v59 = vld [vmem:[%s1037_s5 + $0x20] sm:$0xff]   ;;  %v780_v60 = vld [vmem:[%s1037_s5 + $0x68] sm:$0xff]  }
  0x15   :  { %v781_v61 = vld [vmem:[%s1037_s5 + $0x28] sm:$0xff]   ;;  %v44_v1 = vld [vmem:[%s1038_s2] sm:$0x3]  ;;  %v782_v15 = vld [vmem:[%s1037_s5 + $0x70] sm:$0xff]  }
  0x16   :  { %394 = vmatpush1.bf16.msra.mxu1 %v736_v26  ;;  %v49_v3 = vrot.slane %v44_v1, %v48_v0  ;;  %v53_v4 = vrot.slane %v44_v1, %v52_v2  ;;  %v783_v16 = vld [vmem:[%s1037_s5 + $0x30] sm:$0xff]   ;;  %v785_v18 = vld [vmem:[%s1037_s5 + $0x38] sm:$0xff]   ;;  %v213_v19 = vld [vmem:[%s1039_s4] sm:$0x3] }
  0x17   :  { %147 = vmatpush1.bf16.msra.mxu0 %v715_v17  ;;  %395 = vmatprep.subr.bf16.mxu1 %v737_v27  ;;  %v784_v17 = vld [vmem:[%s1037_s5 + $0x78] sm:$0xff]  }
  0x18   :  { %148 = vmatprep.subr.bf16.mxu0 %v716_v20  ;;  %v218_v20 = vrot.slane %v213_v19, %v48_v0 }
  0x1a   :  { %396 = vmatpush1.bf16.msra.mxu1 %v739_v28 }
  0x1b   :  { %149 = vmatpush1.bf16.msra.mxu0 %v718_v21  ;;  %397 = vmatprep.subr.bf16.mxu1 %v740_v30  ;;  %v222_v21 = vrot.slane %v213_v19, %v52_v2 }
  0x1c   :  { %150 = vmatprep.subr.bf16.mxu0 %v719_v24 }
  0x1e   :  { %398 = vmatpush1.bf16.msra.mxu1 %v742_v31 }
  0x1f   :  { %151 = vmatpush1.bf16.msra.mxu0 %v721_v25  ;;  %399 = vmatprep.subr.bf16.mxu1 %v743_v32 }
  0x20   :  { %675 = vmatprep.subr.bf16.mxu0 %v770_v50 }
  0x22   :  { %169 = vmatmul.mubr.bf16.vlgmr.msra.gmra.mrb[0].mxu0 %v27_v29  ;;  %400 = vmatpush1.bf16.msra.mxu1 %v745_v33  ;;  %v658_v33 = vld [vmem:[%s1040_s6] ss:$0 sm:$0xff] }
  0x23   :  { %401 = vmatprep.subr.bf16.mxu1 %v746_v34  ;;  %676 = vmatpush3.bf16.msra.mxu0 %v771_v51 }
  0x24   :  { %677 = vmatprep.subr.bf16.mxu0 %v772_v52 }
  0x26   :  { %402 = vmatpush1.bf16.msra.mxu1 %v748_v35 }
  0x27   :  { %403 = vmatprep.subr.bf16.mxu1 %v749_v36  ;;  %678 = vmatpush3.bf16.msra.mxu0 %v773_v53 }
  0x28   :  { %679 = vmatprep.subr.bf16.mxu0 %v774_v54 }
  0x2a   :  { %404 = vmatpush1.bf16.msra.mxu1 %v751_v37 }
  0x2b   :  { %405 = vmatprep.subr.bf16.mxu1 %v752_v38  ;;  %680 = vmatpush3.bf16.msra.mxu0 %v775_v55 }
  0x2c   :  { %681 = vmatprep.subr.bf16.mxu0 %v776_v56 }
  0x2e   :  { %406 = vmatpush1.bf16.msra.mxu1 %v754_v39 }
  0x2f   :  { %407 = vmatprep.subr.bf16.mxu1 %v755_v40  ;;  %682 = vmatpush3.bf16.msra.mxu0 %v777_v57 }
  0x30   :  { %683 = vmatprep.subr.bf16.mxu0 %v778_v58 }
  0x32   :  { %408 = vmatpush1.bf16.msra.mxu1 %v757_v41 }
  0x33   :  { %409 = vmatprep.subr.bf16.mxu1 %v758_v42  ;;  %684 = vmatpush3.bf16.msra.mxu0 %v779_v59 }
  0x34   :  { %685 = vmatprep.subr.bf16.mxu0 %v780_v60 }
  0x36   :  { %410 = vmatpush1.bf16.msra.mxu1 %v760_v43 }
  0x37   :  { %411 = vmatprep.subr.bf16.mxu1 %v761_v44  ;;  %686 = vmatpush3.bf16.msra.mxu0 %v781_v61 }
  0x38   :  { %687 = vmatprep.subr.bf16.mxu0 %v782_v15 }
  0x3a   :  { %412 = vmatpush1.bf16.msra.mxu1 %v763_v45 }
  0x3b   :  { %413 = vmatprep.subr.bf16.mxu1 %v764_v46  ;;  %688 = vmatpush3.bf16.msra.mxu0 %v783_v16 }
  0x3c   :  { %689 = vmatprep.subr.bf16.mxu0 %v784_v17 }
  0x3e   :  { %414 = vmatpush1.bf16.msra.mxu1 %v766_v47 }
  0x3f   :  { %415 = vmatprep.subr.bf16.mxu1 %v767_v48  ;;  %690 = vmatpush3.bf16.msra.mxu0 %v785_v18 }
  0x42   :  { %416 = vmatpush1.bf16.msra.mxu1 %v769_v49 }
  0xf5   :  { %v170_v5 = vpop.f32.mrb[0].mxu0 }
  0xf6   :  { %v171_v6 = vadd.f32 %v170_v5, %v49_v3  ;;  %v172_v7 = vpop.f32.mrb[1].mxu0 }
  0xf7   :  { %v173_v8 = vadd.f32 %v172_v7, %v53_v4  ;;  %v174_v9 = vpop.f32.mrb[2].mxu0 }
  0xf8   :  { %v177_v10 = vmax.f32 %v171_v6, 0.0  ;;  %v175_v11 = vpop.f32.mrb[3].mxu0 }
  0xf9   :  { %v178_v12 = vmax.f32 %v173_v8, 0.0 }
  0xfa   :  { %v179_v14 = vpack.c.bf16 %v177_v10, %v177_v10 }
  0xfb   :  { %v180_v13 = vpack.c.bf16 %v178_v12, %v178_v12 }
  0xfd   :  { %417 = vmatprep.mubr.bf16.mxu1 %v180_v13 }
  0xfe   :  { %418 = vmatmul.mubr.bf16.vlgmr.msra.gmra.mrb[0].mxu1 %v179_v14 }
 0x1d1   :  { %v419_v22 = vpop.f32.mrb[0].mxu1 }
 0x1d2   :  { %v420_v23 = vadd.f32 %v419_v22, %v218_v20  ;;  %v421_v24 = vpop.f32.mrb[1].mxu1 }
 0x1d3   :  { %v422_v25 = vadd.f32 %v421_v24, %v222_v21  ;;  %v423_v26 = vpop.f32.mrb[2].mxu1 }
 0x1d4   :  { %v426_v27 = vmax.f32 %v420_v23, 0.0  ;;  %v424_v28 = vpop.f32.mrb[3].mxu1 }
 0x1d5   :  { %v427_v29 = vmax.f32 %v422_v25, 0.0 }
 0x1d6   :  { %v428_v31 = vpack.c.bf16 %v426_v27, %v426_v27 }
 0x1d7   :  { %v429_v30 = vpack.c.bf16 %v427_v29, %v427_v29 }
 0x1d9   :  { %597 = vmatprep.mubr.bf16.mxu0 %v429_v30 }
 0x1da   :  { %598 = vmatmul.mubr.bf16.vlgmr.msra.gmra.mrb[4].mxu0 %v428_v31 }
 0x2ad   :  { %v691_v32 = vpop.f32.mrb[4].mxu0 }
 0x2ae   :  { %v692_v34 = vpop.f32.mrb[5].mxu0 }
 0x2af   :  { %v693_v35 = vadd.f32 %v692_v34, %v691_v32  ;;  %v694_v36 = vpop.f32.mrb[6].mxu0 }
 0x2b0   :  { %v695_v37 = vpop.f32.mrb[7].mxu0 }
 0x2b1   :  { %v600_v38 = vadd.f32 %v693_v35, %v658_v33 }
 0x2b3   :  { %605 = vst [vmem:[%s1041_s7] sm:$0xff] %v600_v38 }

</bundles_post_ra>
